<compile_context>
chip_gen: v7x
topology: tpu7x:2x2x1
jax: 0.10.0
libtpu: 0.0.40
codegen_flags: <defaults>
</compile_context>

<pallas_src>
import functools

import jax
import jax.numpy as jnp
from jax import lax
from jax.experimental import pallas as pl
from jax.experimental.pallas import tpu as pltpu


def _permute_matmul_kernel(x1_ref, x2_ref, *out_refs, emit_v4: bool):
    if emit_v4:
        v3_ref, v4_ref, v5_ref = out_refs
    else:
        v3_ref, v5_ref = out_refs

    x1 = x1_ref[...]  # (Bblk, M, K)
    x2 = x2_ref[...]  # (Bblk, M, N)

    # v3[b, k, n] = sum_m x1[b, m, k] * x2[b, m, n]   == matmul(x1^T, x2)
    # Expressed as dot_general so Mosaic feeds the MXU without an explicit
    # XLU transpose / materialized x1^T tile.
    v3_f32 = lax.dot_general(
        x1, x2,
        dimension_numbers=(((1,), (1,)), ((0,), (0,))),
        preferred_element_type=jnp.float32,
    )  # (Bblk, K, N), f32 accumulator

    # Narrow v3 ONCE to the I/O dtype; reuse it for the output store and as
    # the matmul #2 operand (keeps matmul #2 at native-dtype MXU rate and
    # matches PyTorch's dtype chain).
    v3 = v3_f32.astype(v3_ref.dtype)
    v3_ref[...] = v3

    # v5[b, k, m] = sum_n v3[b, k, n] * x1[b, m, n]   == matmul(v3, x1^T)
    # (contracts v3's N with x1's K -> requires N == K)
    v5_f32 = lax.dot_general(
        v3, x1,
        dimension_numbers=(((2,), (2,)), ((0,), (0,))),
        preferred_element_type=jnp.float32,
    )  # (Bblk, K, M)
    v5_ref[...] = v5_f32.astype(v5_ref.dtype)

    if emit_v4:
        # x2 tile is already resident in VMEM; transpose goes to the XLU slot.
        v4_ref[...] = jnp.transpose(x2, (0, 2, 1)).astype(v4_ref.dtype)


def _vmem_budget_bytes():
    """~75% of per-core VMEM (96 MiB on v5e/v6e, 48 MiB on v7x); safe fallback."""
    try:
        cap = int(pltpu.get_tpu_info().vmem_capacity_bytes)
    except Exception:
        cap = 64 << 20  # conservative (v7x-sized) fallback
    return int(0.75 * cap)


def permute_matmul_model(x1, x2, *, bblk=None):
    """Returns (v3, v4, v5) matching the PyTorch module's forward."""
    B, M, K = x1.shape
    B2, M2, N = x2.shape
    assert B == B2 and M == M2, "batch / contraction dims must match"
    assert N == K, "v5 = matmul(v3, v1) requires x2's last dim == x1's last dim"

    dtype = x1.dtype
    itemsize = jnp.dtype(dtype).itemsize

    # Emit v4 from the kernel only when its last dim (M) is lane-dense;
    # otherwise a wrapper transpose (XLA layout copy) is cheaper than masked
    # partial stores.
    emit_v4 = (M % 128 == 0)

    budget = _vmem_budget_bytes()

    def footprint(bb):
        # Double-buffered I/O tiles + live f32 intermediates (v3_f32, v5_f32).
        io_elems = M * K + M * N + K * N + K * M + (N * M if emit_v4 else 0)
        io = bb * itemsize * io_elems
        f32_live = bb * 4 * (K * N + K * M)
        return 2 * io + f32_live

    if bblk is None:
        # Pick the largest batch block that (a) fits the VMEM budget and
        # (b) leaves >= 2 grid steps so auto double-buffering / megacore
        # sharding actually engage.  Falls back to bblk=1.
        min_steps = 2 if B >= 2 else 1
        bblk = 1
        for cand in range(B, 0, -1):
            if B % cand:
                continue
            if B // cand < min_steps:
                continue
            if footprint(cand) <= budget:
                bblk = cand
                break
    assert B % bblk == 0, "bblk must divide B"
    grid = (B // bblk,)

    vmem_limit = int(min(max(footprint(bblk) + (4 << 20), 16 << 20), budget))

    out_shapes = [jax.ShapeDtypeStruct((B, K, N), dtype)]          # v3
    out_specs = [pl.BlockSpec((bblk, K, N), lambda b: (b, 0, 0))]
    if emit_v4:
        out_shapes.append(jax.ShapeDtypeStruct((B, N, M), dtype))  # v4
        out_specs.append(pl.BlockSpec((bblk, N, M), lambda b: (b, 0, 0)))
    out_shapes.append(jax.ShapeDtypeStruct((B, K, M), dtype))      # v5
    out_specs.append(pl.BlockSpec((bblk, K, M), lambda b: (b, 0, 0)))

    grid_spec = pltpu.PrefetchScalarGridSpec(
        num_scalar_prefetch=0,
        grid=grid,
        in_specs=[
            pl.BlockSpec((bblk, M, K), lambda b: (b, 0, 0)),
            pl.BlockSpec((bblk, M, N), lambda b: (b, 0, 0)),
        ],
        out_specs=out_specs,
    )

    outs = pl.pallas_call(
        functools.partial(_permute_matmul_kernel, emit_v4=emit_v4),
        out_shape=tuple(out_shapes),
        grid_spec=grid_spec,
        compiler_params=pltpu.CompilerParams(
            dimension_semantics=("parallel",),
            vmem_limit_bytes=vmem_limit,
        ),
    )(x1, x2)

    if emit_v4:
        v3, v4, v5 = outs
    else:
        v3, v5 = outs
        # Pure transpose with no reuse of in-kernel tiles at lane-sparse M:
        # let XLA do the layout copy outside the Pallas kernel.
        v4 = jnp.transpose(x2, (0, 2, 1))
    return v3, v4, v5


if __name__ == "__main__":
    # Small shapes consistent with the forward: x1 (B, M, K), x2 (B, M, N), N == K.
    B, M, K = 4, 8, 16
    N = K
    key = jax.random.PRNGKey(0)
    k1, k2 = jax.random.split(key)
    x1 = jax.random.normal(k1, (B, M, K), dtype=jnp.float32)
    x2 = jax.random.normal(k2, (B, M, N), dtype=jnp.float32)

    v3, v4, v5 = jax.block_until_ready(permute_matmul_model(x1, x2))

    # Reference check (plain JAX)
    v1_ref = jnp.transpose(x1, (0, 2, 1))
    v3_ref = jnp.matmul(v1_ref, x2)
    v4_ref = jnp.transpose(x2, (0, 2, 1))
    v5_ref = jnp.matmul(v3_ref, v1_ref)
    assert v3.shape == v3_ref.shape and v4.shape == v4_ref.shape and v5.shape == v5_ref.shape
    assert jnp.allclose(v3, v3_ref, atol=1e-5, rtol=1e-5)
    assert jnp.allclose(v4, v4_ref, atol=1e-5, rtol=1e-5)
    assert jnp.allclose(v5, v5_ref, atol=1e-5, rtol=1e-5)

    print("KERNEL_OK")
</pallas_src>

<mosaic_0001>
module attributes {stable_mosaic.version = 11 : i64} {
  func.func @_permute_matmul_kernel(%arg0: i32, %arg1: memref<2x8x16xf32, #tpu.memory_space<vmem>>, %arg2: memref<2x8x16xf32, #tpu.memory_space<vmem>>, %arg3: memref<2x16x16xf32, #tpu.memory_space<vmem>>, %arg4: memref<2x16x8xf32, #tpu.memory_space<vmem>>) attributes {dimension_semantics = [#tpu.dimension_semantics<parallel>], iteration_bounds = array<i64: 2>, scalar_prefetch = 0 : i64, scratch_operands = 0 : i64, tpu.core_type = #tpu.core_type<tc>, window_params = [{transform_indices = @transform_0, window_bounds = array<i64: 2, 8, 16>}, {transform_indices = @transform_1, window_bounds = array<i64: 2, 8, 16>}, {transform_indices = @transform_2, window_bounds = array<i64: 2, 16, 16>}, {transform_indices = @transform_3, window_bounds = array<i64: 2, 16, 8>}]} {
    %c0 = arith.constant 0 : index
    %c0_0 = arith.constant 0 : index
    %c0_1 = arith.constant 0 : index
    %0 = vector.load %arg1[%c0, %c0_0, %c0_1] : memref<2x8x16xf32, #tpu.memory_space<vmem>>, vector<2x8x16xf32>
    %c0_2 = arith.constant 0 : index
    %c0_3 = arith.constant 0 : index
    %c0_4 = arith.constant 0 : index
    %1 = vector.load %arg2[%c0_2, %c0_3, %c0_4] : memref<2x8x16xf32, #tpu.memory_space<vmem>>, vector<2x8x16xf32>
    %cst = arith.constant dense<0.000000e+00> : vector<2x16x16xf32>
    %2 = tpu.matmul %0, %1, %cst {dimension_numbers = #tpu.dot_dimension_numbers<[1], [1], [2], [2], [0, 0, 0, 2, 1, 2], [0], [0]>} : vector<2x8x16xf32>, vector<2x8x16xf32>, vector<2x16x16xf32> -> vector<2x16x16xf32>
    %c0_5 = arith.constant 0 : index
    %c0_6 = arith.constant 0 : index
    %c0_7 = arith.constant 0 : index
    %3 = vector.load %arg3[%c0_5, %c0_6, %c0_7] : memref<2x16x16xf32, #tpu.memory_space<vmem>>, vector<2x16x16xf32>
    tpu.vector_store %arg3[%c0_5, %c0_6, %c0_7], %2 {strides = array<i32>} : memref<2x16x16xf32, #tpu.memory_space<vmem>>, vector<2x16x16xf32>,
    %cst_8 = arith.constant dense<0.000000e+00> : vector<2x16x8xf32>
    %4 = tpu.matmul %2, %0, %cst_8 {dimension_numbers = #tpu.dot_dimension_numbers<[2], [2], [1], [1], [0, 0, 0, 1, 1, 1], [0], [0]>} : vector<2x16x16xf32>, vector<2x8x16xf32>, vector<2x16x8xf32> -> vector<2x16x8xf32>
    %c0_9 = arith.constant 0 : index
    %c0_10 = arith.constant 0 : index
    %c0_11 = arith.constant 0 : index
    %5 = vector.load %arg4[%c0_9, %c0_10, %c0_11] : memref<2x16x8xf32, #tpu.memory_space<vmem>>, vector<2x16x8xf32>
    tpu.vector_store %arg4[%c0_9, %c0_10, %c0_11], %4 {strides = array<i32>} : memref<2x16x8xf32, #tpu.memory_space<vmem>>, vector<2x16x8xf32>,
    return
  }
  func.func @transform_0(%arg0: i32) -> (i32, i32, i32) {
    %c0_i32 = arith.constant 0 : i32
    %c0_i32_0 = arith.constant 0 : i32
    %c0_i32_1 = arith.constant 0 : i32
    return %arg0, %c0_i32, %c0_i32_0 : i32, i32, i32
  }
  func.func @transform_1(%arg0: i32) -> (i32, i32, i32) {
    %c0_i32 = arith.constant 0 : i32
    %c0_i32_0 = arith.constant 0 : i32
    %c0_i32_1 = arith.constant 0 : i32
    return %arg0, %c0_i32, %c0_i32_0 : i32, i32, i32
  }
  func.func @transform_2(%arg0: i32) -> (i32, i32, i32) {
    %c0_i32 = arith.constant 0 : i32
    %c0_i32_0 = arith.constant 0 : i32
    %c0_i32_1 = arith.constant 0 : i32
    return %arg0, %c0_i32, %c0_i32_0 : i32, i32, i32
  }
  func.func @transform_3(%arg0: i32) -> (i32, i32, i32) {
    %c0_i32 = arith.constant 0 : i32
    %c0_i32_0 = arith.constant 0 : i32
    %c0_i32_1 = arith.constant 0 : i32
    return %arg0, %c0_i32, %c0_i32_0 : i32, i32, i32
  }
}

</mosaic_0001>

<bundles_post_ra>
// kernel: tpu_custom_call.1
= control target key start
LH: loop header
LB: loop body
LE: loop exit
PB: predicated region body
PF: predicated region fallthrough
CT: control target
= control target key end

     0   :  { %9 = vsyncpa [#allocation3], 0  ;;  %s1335_s0 = inlined_call_operand.hbm [shape: f32[4,8,16], index: 0, kind: input, shape index: {}]   ;;  %s1336_s1 = inlined_call_operand.hbm [shape: f32[4,8,16], index: 1, kind: input, shape index: {}]   ;;  %s1337_s2 = inlined_call_operand.hbm [shape: f32[4,16,16], index: 2, kind: output, shape index: {0}]   ;;  %s1338_s3 = inlined_call_operand.vmem [shape: f32[4,16,8], index: 3, kind: output, shape index: {1}]  }
   0x1   :  { %11 = vsyncpa [#allocation3 + $0x1], 0 }
   0x2   :  { %12 = vsyncpa [#allocation6], 0 }
   0x3   :  { %14 = vsyncpa [#allocation6 + $0x1], 0 }
   0x4   :  { %15 = vsyncpa [#allocation4], 0 }
   0x5   :  { %17 = vsyncpa [#allocation4 + $0x1], 0  ;;  %s1087_s12 = smov 0   ;;  %s1089_s13 = smov 0  }
   0x6   :  { %s1091_s14 = smov 0   ;;  %s1093_s15 = smov 0  }
   0x7 LB: > { %s1108_s16 = sadd.s32 4294967295, %s1058_s15   ;;  %s803_s17 = sadd.s32 4294967294, %s1058_s15   ;;  %s1058_s15 = sphi %s1093_s15, %s1354_s15   ;;  %s1054_s14 = sphi %s1091_s14, %s1353_s14   ;;  %s1050_s13 = sphi %s1089_s13, %s1352_s13   ;;  %s1046_s12 = sphi %s1087_s12, %s1351_s12  }
   0x8   : > { %s1112_s18 = sadd.s32 1, %s1058_s15   ;;  %s30_s19 = sadd.s32 1, %s1054_s14 }
   0x9   : > { %s27_s20 = ssub.s32 %s1058_s15, %s1112_s18  ;;  %p37_p0 = scmp.ne.s32.totalorder %s1054_s14, %s1050_s13 }
   0xa   : > { %p28_p1 = scmp.eq.s32.totalorder %s27_s20, 0  ;;  %p38_p2 = scmp.eq.s32.totalorder %s1058_s15, 0 }
   0xb   : > { %p43_p3 = scmp.ne.s32.totalorder %s1050_s13, %s1046_s12  ;;  %p44_p4 = scmp.eq.s32.totalorder %s1108_s16, 0 }
   0xc   : > { %s1124_s21 = scalar_select %p28_p1, %s1054_s14, %s30_s19  }
   0xd   : > { %p1126_p5 = por %p38_p2, %p37_p0  ;;  %p1130_p6 = por %p44_p4, %p43_p3 }
   0xe   : > { %p93_p7 = scmp.eq.s32.totalorder %s1108_s16, 1  ;;  %p99_p8 = scmp.eq.s32.totalorder %s803_s17, 1 }
   0xf   : > { %s1342_s23 = scalar_select %p1130_p6, 1, 0 }
  0x10   : > { %p889_p10 = scmp.lt.s32.totalorder %s1058_s15, 2  ;;  %p1137_p11 = por %p93_p7, %p37_p0 }
  0x11   : > { %p1141_p12 = por %p99_p8, %p43_p3  ;;  %s1146_s26 = sand.u32 1, %s1054_s14  }
  0x12   : > { %s1343_s24 = scalar_select %p1137_p11, 1, 0 }
  0x13   : > { %s1344_s25 = scalar_select %p1141_p12, 1, 0 }
  0x14   : > { %s835_s27 = sshll.u32 %s1058_s15, 8  ;;  %s806_s28 = sshll.u32 %s1146_s26, 4 }
  0x15   : > { %s1155_s4 = scalar_lea.hbm %s1335_s0, %s835_s27  ;;  %s149_s5 = scalar_lea.vmem [#allocation2], %s806_s28 }
  0x16   : > { %s156_s6 = sshll.u32 %s149_s5, 4  ;;  %p1161_p13 = pnand %p889_p10, %p1126_p5  ;;  %s1165_s6 = int_to_ptr.vmem [resolvable:$true] %s156_s6 }
  0x17   : > { %s146_s8 = scalar_lea.sflag [#allocation3], %s1146_s26  ;;  %s928_s9 = scalar_lea.hbm %s1155_s4, 256 }
  0x18   : > { %p929_p0 = scmp.ne.s32.totalorder %s1155_s4, %s928_s9  ;;  %p930_p1 = pneg %p1161_p13 }
  0x19   : > { %s933_s17 = scalar_lea.hbm %s1335_s0, 512  ;;  %p934_p4 = scmp.lt.u32.totalorder %s1155_s4, %s1335_s0 }
  0x1a   : > { %p931_p2 = pnand %p930_p1, %p929_p0  ;;  %p935_p5 = scmp.lt.u32.totalorder %s933_s17, %s928_s9 }
  0x1b   : > { %p937_p8 = scmp.lt.u32.totalorder %s928_s9, %s1155_s4 }
  0x1c   : > { %p932_p3 = pneg %p931_p2  ;;  %p936_p7 = por %p935_p5, %p934_p4 }
  0x1e   : > { %p938_p10 = por %p937_p8, %p936_p7 }
  0x20   : > { %p939_p9 = pnand %p938_p10, %p932_p3 }
  0x22   : > { %942 = shalt.err (!%p939_p9)
}
  0x23   : > { %s943_s22 = scalar_lea.vmem %s1165_s6, 256  ;;  %s1060_s29 = smov [#allocation2]  }
  0x24   : > { %p944_p0 = scmp.ne.s32.totalorder %s1165_s6, %s943_s22  ;;  %s948_s30 = sshll.u32 %s1060_s29, 4  ;;  %s949_s30 = int_to_ptr.vmem [resolvable:$false] %s948_s30 }
  0x25   : > { %s950_s5 = scalar_lea.vmem %s949_s30, 512  ;;  %p951_p11 = scmp.lt.s32.totalorder %s1165_s6, %s949_s30 }
  0x26   : > { %p946_p2 = pnand %p944_p0, %p930_p1  ;;  %p952_p4 = scmp.lt.s32.totalorder %s950_s5, %s943_s22 }
  0x28   : > { %p947_p12 = pneg %p946_p2  ;;  %p953_p5 = por %p952_p4, %p951_p11 }
  0x2a   : > { %p954_p7 = pnand %p953_p5, %p947_p12 }
  0x2c   : > { %957 = shalt.err (!%p954_p7)
}
  0x2d   : > { %s1061_s9 = smov 128   ;;  %s1062_s10 = smov 8  }
  0x2e   : > { %881 = dma.hbm_to_vmem [thread:$0]  (!%p1161_p13), %s1155_s4, 256, %s1165_s6, %s146_s8, %s1061_s9, %s1061_s9, %s1062_s10  }
  0x2f   : > { %p812_p9 = scmp.ge.s32.totalorder %s1058_s15, 1  ;;  %p185_p11 = scmp.lt.s32.totalorder %s1058_s15, 3 }
  0x30   : > { %s1209_s20 = scalar_lea.hbm %s1336_s1, %s835_s27  ;;  %s170_s22 = scalar_lea.vmem [#allocation5], %s806_s28 }
  0x31   : > { %p1200_p12 = pnand %p812_p9, %p185_p11  ;;  %s177_s29 = sshll.u32 %s170_s22, 4  ;;  %s1213_s29 = int_to_ptr.vmem [resolvable:$true] %s177_s29 }
  0x32   : > { %s167_s4 = scalar_lea.sflag [#allocation6], %s1146_s26  ;;  %s958_s6 = scalar_lea.hbm %s1209_s20, 256 }
  0x33   : > { %p959_p3 = scmp.ne.s32.totalorder %s1209_s20, %s958_s6  ;;  %s963_s27 = scalar_lea.hbm %s1336_s1, 512 }
  0x34   : > { %p964_p0 = scmp.lt.u32.totalorder %s1209_s20, %s1336_s1  ;;  %p965_p2 = scmp.lt.u32.totalorder %s963_s27, %s958_s6 }
  0x35   : > { %p961_p8 = pnand %p959_p3, %p930_p1  ;;  %p967_p5 = scmp.lt.u32.totalorder %s958_s6, %s1209_s20 }
  0x36   : > { %p966_p4 = por %p965_p2, %p964_p0 }
  0x37   : > { %p962_p10 = pneg %p961_p8 }
  0x38   : > { %p968_p7 = por %p967_p5, %p966_p4 }
  0x3a   : > { %p969_p9 = pnand %p968_p7, %p962_p10 }
  0x3c   : > { %972 = shalt.err (!%p969_p9)
}
  0x3d   : > { %s973_s28 = scalar_lea.vmem %s1213_s29, 256  ;;  %s1063_s19 = smov [#allocation5]  }
  0x3e   : > { %p974_p11 = scmp.ne.s32.totalorder %s1213_s29, %s973_s28  ;;  %s978_s22 = sshll.u32 %s1063_s19, 4  ;;  %s979_s22 = int_to_ptr.vmem [resolvable:$false] %s978_s22 }
  0x3f   : > { %s980_s8 = scalar_lea.vmem %s979_s22, 512  ;;  %p981_p6 = scmp.lt.s32.totalorder %s1213_s29, %s979_s22 }
  0x40   : > { %p976_p3 = pnand %p974_p11, %p930_p1  ;;  %p982_p0 = scmp.lt.s32.totalorder %s980_s8, %s973_s28 }
  0x42   : > { %p977_p8 = pneg %p976_p3  ;;  %p983_p2 = por %p982_p0, %p981_p6 }
  0x44   : > { %p984_p4 = pnand %p983_p2, %p977_p8 }
  0x46   : > { %987 = shalt.err (!%p984_p4)
}
  0x47   : > { %884 = dma.hbm_to_vmem [thread:$0]  (!%p1161_p13), %s1209_s20, 256, %s1213_s29, %s167_s4, %s1061_s9, %s1061_s9, %s1062_s10  }
  0x48   : > { %189 = sbr.rel (%p1200_p12) target bundleno = 652 (0x28c), region = 28  ;;  %s1247_s6 = sand.u32 (!%p1200_p12), 1, %s1050_s13  }
  0x49   : > { %s813_s30 = sshll.u32 (!%p1200_p12), %s1247_s6, 4  ;;  %s192_s27 = scalar_lea.sflag (!%p1200_p12), [#allocation3], %s1247_s6 }
  0x4a   : > { %s195_s7 = scalar_lea.vmem (!%p1200_p12), [#allocation2], %s813_s30  ;;  %p1347_p6 = scmp.ne.s32.totalorder (!%p1200_p12), %s1342_s23, 0 }
  0x4f   : > { %1033 = dma.done.wait (%p1347_p6), %s192_s27, 256  }
  0x50   : > { %1035 = vsyncadd (%p1347_p6), %s192_s27, 4294967040  ;;  %s201_s26 = scalar_lea.sflag [#allocation6], %s1247_s6  ;;  %s204_s9 = scalar_lea.vmem [#allocation5], %s813_s30 }
  0x51   : > { %1037 = dma.done.wait (%p1347_p6), %s201_s26, 256  }
  0x52   : > { %1039 = vsyncadd (%p1347_p6), %s201_s26, 4294967040  ;;  %v248_v0 = vld [vmem:[%s195_s7] sm:$0xff]  ;;  %v249_v2 = vld [vmem:[%s195_s7 + $0x8] sm:$0xff]  ;;  %vm479_vm0 = vcmask 130048   ;;  %vm284_vm1 = vcmask 64512   ;;  %s815_s23 = sshll.u32 %s1247_s6, 5 }
  0x53   : > { %252 = vxpose.xlu0.b32.start.end [1/1] (short) (narrow) %v248_v0, 16  ;;  %v250_v1 = vld [vmem:[%s204_s9] sm:$0xff]  ;;  %v251_v3 = vld [vmem:[%s204_s9 + $0x8] sm:$0xff]  ;;  %s229_s10 = scalar_lea.vmem [#allocation7], %s815_s23  ;;  %s839_s20 = sshll.u32 %s1108_s16, 9 }
  0x54   : > { %852 = vmatprep.subr.mxu0 %v250_v1  ;;  %857 = vmatprep.subr.mxu1 %v251_v3  ;;  %s677_s11 = sshll.u32 %s229_s10, 4  ;;  %s1283_s5 = scalar_lea.hbm %s1337_s2, %s839_s20  ;;  %s1277_s11 = int_to_ptr.vmem [resolvable:$true] %s677_s11 }
  0x55   : > { %853 = vmatpush3.msra.mxu0 %v250_v1  ;;  %858 = vmatpush3.msra.mxu1 %v251_v3  ;;  %s657_s17 = scalar_lea.sflag [#allocation4], %s1247_s6  ;;  %s988_s28 = scalar_lea.vmem %s1277_s11, 512 }
  0x56   : > { %862 = vmatprep.subr.msk.mxu0 %vm479_vm0, %v248_v0  ;;  %867 = vmatprep.subr.msk.mxu1 %vm479_vm0, %v249_v2  ;;  %p989_p13 = scmp.ne.s32.totalorder %s1277_s11, %s988_s28  ;;  %p1348_p1 = scmp.ne.s32.totalorder %s1343_s24, 0 }
  0x57   : > { %s1064_s19 = smov [#allocation7]  }
  0x58   : > { %366 = vxpose.xlu0.b32.start.end [1/1] (short) (narrow) %v249_v2, 16  ;;  %p990_p12 = pnand %p989_p13, %p1348_p1  ;;  %s992_s22 = sshll.u32 %s1064_s19, 4  ;;  %s993_s22 = int_to_ptr.vmem [resolvable:$false] %s992_s22 }
  0x59   : > { %s994_s8 = scalar_lea.vmem %s993_s22, 1024  ;;  %p995_p5 = scmp.lt.s32.totalorder %s1277_s11, %s993_s22 }
  0x5a   : > { %p991_p10 = pneg %p990_p12  ;;  %p996_p7 = scmp.lt.s32.totalorder %s994_s8, %s988_s28 }
  0x5c   : > { %p997_p9 = por %p996_p7, %p995_p5 }
  0x5e   : > { %p998_p11 = pnand %p997_p9, %p991_p10 }
  0xd3   : > { %v268_v4 = vpop.trf.xlu0 }
  0xd4   : > { %854 = vmatprep.mubr.msk.f32.mxu0 %vm284_vm1, %v268_v4 }
  0xd7   : > { %v269_v5 = vpop.trf.xlu0 }
  0xd8   : > { %855 = vmatmul.mubr.msk.f32.vlgmr.msra.gmra.mrb[0].mxu0 %vm284_vm1, %v269_v5 }
  0xd9   : > { %863 = vmatpush3.xpose.msk.msra.mxu0 %vm479_vm0, %v248_v0 }
  0xdb   : > { %v382_v6 = vpop.trf.xlu0 }
  0xdc   : > { %859 = vmatprep.mubr.msk.f32.mxu1 %vm284_vm1, %v382_v6 }
  0xdf   : > { %v383_v7 = vpop.trf.xlu0 }
  0xe0   : > { %860 = vmatmul.mubr.msk.f32.vlgmr.msra.gmra.mrb[0].mxu1 %vm284_vm1, %v383_v7 }
  0xe1   : > { %868 = vmatpush3.xpose.msk.msra.mxu1 %vm479_vm0, %v249_v2 }
 0x1ab   : > { %v856_v8 = vpop.f32.mrb[0].mxu0 }
 0x1ac   : > { %481 = vst.msk [vmem:[%s229_s10 + $0x8] sm:$0xff] %vm479_vm0, %v856_v8  ;;  %v357_v9 = vpop.f32.mrb[1].mxu0 }
 0x1ad   : > { %480 = vst.msk [vmem:[%s229_s10] sm:$0xff] %vm479_vm0, %v357_v9  ;;  %864 = vmatprep.mubr.msk.f32.mxu0 %vm479_vm0, %v357_v9 }
 0x1ae   : > { %865 = vmatmul.mubr.msk.f32.vlgmr.msra.gmra.mrb[2].mxu0 %vm479_vm0, %v856_v8 }
 0x1b3   : > { %v861_v10 = vpop.f32.mrb[0].mxu1 }
 0x1b4   : > { %483 = vst.msk [vmem:[%s229_s10 + $0x18] sm:$0xff] %vm479_vm0, %v861_v10  ;;  %v470_v11 = vpop.f32.mrb[1].mxu1 }
 0x1b5   : > { %482 = vst.msk [vmem:[%s229_s10 + $0x10] sm:$0xff] %vm479_vm0, %v470_v11  ;;  %869 = vmatprep.mubr.msk.f32.mxu1 %vm479_vm0, %v470_v11 }
 0x1b6   : > { %870 = vmatmul.mubr.msk.f32.vlgmr.msra.gmra.mrb[2].mxu1 %vm479_vm0, %v861_v10 }
 0x1b7   : > { %1001 = shalt.err (!%p998_p11)
}
 0x1b8   : > { %s1002_s30 = scalar_lea.hbm %s1283_s5, 512  ;;  %s1006_s26 = scalar_lea.hbm %s1337_s2, 1024 }
 0x1b9   : > { %p1003_p3 = scmp.ne.s32.totalorder %s1283_s5, %s1002_s30  ;;  %p1007_p2 = scmp.lt.u32.totalorder %s1283_s5, %s1337_s2 }
 0x1ba   : > { %p1008_p4 = scmp.lt.u32.totalorder %s1006_s26, %s1002_s30  ;;  %p1010_p13 = scmp.lt.u32.totalorder %s1002_s30, %s1283_s5 }
 0x1bb   : > { %p1004_p8 = pnand %p1003_p3, %p1348_p1 }
 0x1bc   : > { %p1009_p6 = por %p1008_p4, %p1007_p2 }
 0x1bd   : > { %p1005_p0 = pneg %p1004_p8 }
 0x1be   : > { %p1011_p12 = por %p1010_p13, %p1009_p6 }
 0x1c0   : > { %p1012_p10 = pnand %p1011_p12, %p1005_p0 }
 0x1c2   : > { %1015 = shalt.err (!%p1012_p10)
}
 0x1c3   : > { %s1065_s10 = smov 128   ;;  %s1066_s20 = smov 8  }
 0x1c4   : > { %876 = dma.vmem_to_hbm [thread:$0]  (%p1348_p1), %s1277_s11, 512, %s1283_s5, %s657_s17, %s1065_s10, %s1065_s10, %s1066_s20  }
 0x1c5   : > { %s816_s29 = sshll.u32 %s1108_s16, 1 }
 0x1c6   : > { %p242_p5 = scmp.lt.s32.totalorder %s816_s29, 3 }
 0x1c8   : > { %s1356_s29 = smov (!%p242_p5, %s816_s29), 3 }
 0x1c9   : > { %s837_s4 = sshll.u32 %s1356_s29, 4 }
 0x1ca   : > { %s246_s22 = scalar_lea.vmem %s1338_s3, %s837_s4 }
 0x281   : > { %v866_v12 = vpop.f32.mrb[2].mxu0 }
 0x282   : > { %653 = vst.msk [vmem:[%s246_s22 + $0x8] sm:$0xff] %vm284_vm1, %v866_v12  ;;  %v559_v13 = vpop.f32.mrb[3].mxu0 }
 0x283   : > { %652 = vst.msk [vmem:[%s246_s22] sm:$0xff] %vm284_vm1, %v559_v13 }
 0x289   : > { %v871_v14 = vpop.f32.mrb[2].mxu1 }
 0x28a   : > { %655 = vst.msk [vmem:[%s246_s22 + $0x18] sm:$0xff] %vm284_vm1, %v871_v14  ;;  %v643_v15 = vpop.f32.mrb[3].mxu1 }
 0x28b   : > { %654 = vst.msk [vmem:[%s246_s22 + $0x10] sm:$0xff] %vm284_vm1, %v643_v15 }
 0x28c PF: > { %s696_s16 = sand.u32 1, %s1046_s12   ;;  %p1349_p1 = scmp.ne.s32.totalorder %s1344_s25, 0 }
 0x28d   : > { %p1350_p7 = scmp.ge.s32.totalorder %s1058_s15, 2  ;;  %s697_s24 = scalar_lea.sflag [#allocation4], %s696_s16 }
 0x28f   : > { %p886_p9 = pnand %p1350_p7, %p1349_p1 }
 0x291   : > { %1041 = dma.done.wait (!%p886_p9), %s697_s24, 512  }
 0x292   : > { %1043 = vsyncadd (!%p886_p9), %s697_s24, 4294966784  ;;  %p20_p11 = scmp.ge.s32.totalorder %s1112_s18, 4   ;;  %s1351_s12 = smov %s1050_s13 }
 0x293   : > { %s1352_s13 = smov %s1054_s14  ;;  %s1353_s14 = smov %s1124_s21 }
 0x294   : > { %s1354_s15 = smov %s1112_s18  ;;  %22 = sbr.rel (!%p20_p11) target bundleno = 7 (0x7), region = 98 }
 0x29b   :  { %711 = vsyncpa [#allocation3], 1 }
 0x29c   :  { %713 = vsyncpa [#allocation3 + $0x1], 1 }
 0x29d   :  { %714 = vsyncpa [#allocation6], 1 }
 0x29e   :  { %716 = vsyncpa [#allocation6 + $0x1], 1 }
 0x29f   :  { %717 = vsyncpa [#allocation4], 1 }
 0x2a0   :  { %719 = vsyncpa [#allocation4 + $0x1], 1 }

</bundles_post_ra>
